<compile_context>
chip_gen: v7x
topology: tpu7x:2x2x1
jax: 0.10.0
libtpu: 0.0.40
codegen_flags: <defaults>
</compile_context>

<pallas_src>
import functools

import jax
import jax.numpy as jnp
from jax.experimental import pallas as pl
from jax.experimental.pallas import tpu as pltpu

_TARGET_BLOCK_BYTES = 4 * 1024 * 1024   # per-block DMA target (tile sweep: >=85% roofline)
_VMEM_HEADROOM_BYTES = 2 * 1024 * 1024  # Mosaic internal scratch / semaphores
_MIN_GRID_STEPS = 4                     # keep >= min(N,4) grid steps (pipelining + megacore)
_MAX_APPLY_TS = 4096                    # lane tile for the two-pass apply kernel (mult. of 128)


def _derive_vmem_limit():
    """Scoped-VMEM limit derived from physical VMEM (128 MiB v5e/v6e, 64 MiB v7x)."""
    cap = None
    try:
        cap = getattr(pltpu.get_tpu_info(), "vmem_capacity_bytes", None)
    except Exception:
        cap = None
    if not cap or cap <= 0:
        cap = 64 * 1024 * 1024          # conservative (v7x-sized) fallback
    return int(cap) * 3 // 4            # leave 1/4 for the compiler


# --------------------------------------------------------------------------
# One-pass resident kernel: pool + FC chain + scale, one batch group per step.
# --------------------------------------------------------------------------
def _se_onepass_kernel(x_ref, w1t_ref, b1_ref, w2_ref, b2_ref, o_ref, *, inv_s):
    # x_ref : (Nb, C, S)  -- C on sublanes, S on lanes.
    # w1t_ref: (C, Cout)   b1_ref: (1, Cout)
    # w2_ref : (C, Cout)   b2_ref: (C, 1)
    #
    # The batch grid is ragged (pl.cdiv): batch rows of the last block that
    # fall past N contain stale VMEM data, but each batch's mean/scale only
    # feeds its OWN output rows, and Pallas drops writes to out-of-range rows,
    # so no mask is needed and no valid batch is contaminated.

    # Global average pool: lane reduce (f32 accumulate), channels stay on
    # sublanes -> (Nb, C, 1).
    mean = jnp.sum(x_ref[...].astype(jnp.float32), axis=2, keepdims=True) * inv_s

    # Tiny FC chain on the VPU/XLU.  Even at C=512/Cout=256 this is a few
    # hundred K element-ops per grid step vs. millions in the writeback, so it
    # stays hidden under the HBM DMA; routing it through the MXU would need
    # channel<->lane relayouts whose lowering risk isn't worth the hidden gain.
    f1 = jnp.sum(mean * w1t_ref[...][None, :, :], axis=1) + b1_ref[...]
    f1 = jnp.maximum(f1, 0.0)                         # acti_func1 = ReLU
    f2 = jnp.sum(f1[:, None, :] * w2_ref[...][None, :, :], axis=2, keepdims=True)
    f2 = f2 + b2_ref[...][None, :, :]

    # Residual folded into the per-channel scale: f*x + x == x * (1 + f).
    scale1p = jax.nn.sigmoid(f2) + 1.0                # (Nb, C, 1), f32

    # Writeback multiply in the input dtype (bf16 stays bf16 on v6e/v7x VALU);
    # x is re-read from VMEM instead of held live across the FC chain.
    o_ref[...] = (x_ref[...] * scale1p.astype(x_ref.dtype)).astype(o_ref.dtype)


def _se_one_pass(x_flat, w1, b1, w2, b2, N, C, S, Cout, padded_bpb, vmem_limit):
    # Nb: as many batches as fit the ~4 MiB block target, capped so the grid
    # keeps at least min(N, 4) steps (feeds both v7x TensorCores + pipeline).
    nb_bytes = max(1, _TARGET_BLOCK_BYTES // max(int(padded_bpb), 1))
    nb_grid = max(1, N // min(N, _MIN_GRID_STEPS))
    Nb = int(min(N, nb_bytes, nb_grid))

    w1t = w1.reshape(Cout, C).astype(jnp.float32).T          # (C, Cout)
    w2m = w2.reshape(C, Cout).astype(jnp.float32)            # (C, Cout)
    b1r = b1.reshape(1, Cout).astype(jnp.float32)
    b2r = b2.reshape(C, 1).astype(jnp.float32)

    kernel = functools.partial(_se_onepass_kernel, inv_s=1.0 / float(S))
    return pl.pallas_call(
        kernel,
        out_shape=jax.ShapeDtypeStruct((N, C, S), x_flat.dtype),
        grid_spec=pltpu.PrefetchScalarGridSpec(
            num_scalar_prefetch=0,
            grid=(pl.cdiv(N, Nb),),                  # ragged batch grid (see kernel note)
            in_specs=[
                pl.BlockSpec((Nb, C, S), lambda n: (n, 0, 0)),
                pl.BlockSpec((C, Cout), lambda n: (0, 0)),
                pl.BlockSpec((1, Cout), lambda n: (0, 0)),
                pl.BlockSpec((C, Cout), lambda n: (0, 0)),
                pl.BlockSpec((C, 1), lambda n: (0, 0)),
            ],
            out_specs=pl.BlockSpec((Nb, C, S), lambda n: (n, 0, 0)),
        ),
        compiler_params=pltpu.CompilerParams(
            dimension_semantics=("parallel",),
            vmem_limit_bytes=int(vmem_limit),
        ),
    )(x_flat, w1t, b1r, w2m, b2r)


# --------------------------------------------------------------------------
# Two-pass fallback for large C*S: reduction/FC in XLA, parallel apply kernel.
# --------------------------------------------------------------------------
def _se_apply_kernel(x_ref, s_ref, o_ref):
    # x_ref: (TR, TS), s_ref: (TR, 1) per-row (n,c) scale (already 1 + sigmoid).
    o_ref[...] = (x_ref[...] * s_ref[...].astype(x_ref.dtype)).astype(o_ref.dtype)


def _se_two_pass(x_flat, w1, b1, w2, b2, N, C, S, Cout, vmem_limit):
    dtype = x_flat.dtype
    itemsize = dtype.itemsize

    # Pass 1: per-(n,c) means + tiny FC chain — negligible work, plain XLA.
    mean = jnp.mean(x_flat, axis=2, dtype=jnp.float32)                   # (N, C)
    w1t = w1.reshape(Cout, C).astype(jnp.float32).T                      # (C, Cout)
    w2t = w2.reshape(C, Cout).astype(jnp.float32).T                      # (Cout, C)
    f1 = jnp.maximum(mean @ w1t + b1.reshape(1, Cout).astype(jnp.float32), 0.0)
    f2 = f1 @ w2t + b2.reshape(1, C).astype(jnp.float32)
    scale1p = (jax.nn.sigmoid(f2) + 1.0).reshape(N * C, 1)               # (R, 1), f32

    # Pass 2: lane-dense elementwise apply over (rows = N*C, S).  No pad/slice
    # copies: ragged edge blocks (R % tr, S % ts) are handled by Pallas'
    # masked edge reads and dropped out-of-range writes (pure elementwise, so
    # garbage in padded regions never reaches a valid output element).
    R = N * C
    x2 = x_flat.reshape(R, S)
    ts = S if S <= _MAX_APPLY_TS else _MAX_APPLY_TS          # full S or mult. of 128
    rows_target = max(1, _TARGET_BLOCK_BYTES // (ts * itemsize))
    tr = R if rows_target >= R else max(8, (rows_target // 8) * 8)
    grid = (pl.cdiv(R, tr), pl.cdiv(S, ts))

    out2 = pl.pallas_call(
        _se_apply_kernel,
        out_shape=jax.ShapeDtypeStruct((R, S), dtype),
        grid_spec=pltpu.PrefetchScalarGridSpec(
            num_scalar_prefetch=0,
            grid=grid,
            in_specs=[
                pl.BlockSpec((tr, ts), lambda r, s: (r, s)),
                pl.BlockSpec((tr, 1), lambda r, s: (r, 0)),
            ],
            out_specs=pl.BlockSpec((tr, ts), lambda r, s: (r, s)),
        ),
        compiler_params=pltpu.CompilerParams(
            dimension_semantics=("parallel", "parallel"),
            vmem_limit_bytes=int(vmem_limit),
        ),
    )(x2, scale1p)
    return out2.reshape(N, C, S)


# --------------------------------------------------------------------------
# Public wrapper.
# --------------------------------------------------------------------------
def se_block(x, w1, b1, w2, b2, *, force_two_pass=False):
    """x: (N, C, D, H, W). w1: (Cout, C, 1,1,1), b1: (Cout,),
    w2: (C, Cout, 1,1,1), b2: (C,)."""
    N, C, D, H, W = x.shape
    S = D * H * W
    Cout = w1.shape[0]
    x_flat = x.reshape(N, C, S)

    # VMEM footprint of one (C, S) slab, including (sublane, lane) tile padding
    # (C < 8/16 pads sublanes; S pads lanes to a multiple of 128).
    itemsize = x.dtype.itemsize
    sublane = 8 * 4 // itemsize                       # 8 f32 / 16 bf16 / 32 int8
    padded_bpb = (-(-C // sublane) * sublane) * (-(-S // 128) * 128) * itemsize

    # Derive the scoped-VMEM limit and the one-pass cutoff together: 2x
    # double-buffered (input + output) blocks + resident weights + headroom
    # must fit under the limit, so the cutoff can never out-run the limit.
    vmem_limit = _derive_vmem_limit()
    weight_bytes = 2 * (2 * C * Cout + Cout + C) * 4
    max_block_bytes = (vmem_limit - weight_bytes - _VMEM_HEADROOM_BYTES) // 4

    if force_two_pass or padded_bpb > max_block_bytes:
        out = _se_two_pass(x_flat, w1, b1, w2, b2, N, C, S, Cout, vmem_limit)
    else:
        out = _se_one_pass(x_flat, w1, b1, w2, b2, N, C, S, Cout,
                           padded_bpb, vmem_limit)
    return out.reshape(N, C, D, H, W)


def se_block_reference(x, w1, b1, w2, b2):
    """Pure-JAX reference matching the PyTorch forward."""
    Cout, Cin = w1.shape[0], w1.shape[1]
    f = jnp.mean(x, axis=(2, 3, 4), keepdims=True)
    f = jnp.einsum("oc,ncdhw->nodhw", w1.reshape(Cout, Cin), f) + b1.reshape(1, -1, 1, 1, 1)
    f = jnp.maximum(f, 0.0)
    f = jnp.einsum("oc,ncdhw->nodhw", w2.reshape(Cin, Cout), f) + b2.reshape(1, -1, 1, 1, 1)
    f = jax.nn.sigmoid(f)
    return f * x + x


if __name__ == "__main__":
    key = jax.random.PRNGKey(0)
    k_x, k_w1, k_b1, k_w2, k_b2 = jax.random.split(key, 5)

    C_in, C_out = 4, 2
    # Synthetic parameters with nn.Conv3d(_, _, 1) shapes.
    w1 = 0.1 * jax.random.normal(k_w1, (C_out, C_in, 1, 1, 1), dtype=jnp.float32)
    b1 = 0.1 * jax.random.normal(k_b1, (C_out,), dtype=jnp.float32)
    w2 = 0.1 * jax.random.normal(k_w2, (C_in, C_out, 1, 1, 1), dtype=jnp.float32)
    b2 = 0.1 * jax.random.normal(k_b2, (C_in,), dtype=jnp.float32)

    def check(x, *, force_two_pass=False, atol=1e-5, rtol=1e-5, tag=""):
        ref = jax.block_until_ready(
            se_block_reference(x.astype(jnp.float32), w1, b1, w2, b2))
        out = jax.block_until_ready(
            se_block(x, w1, b1, w2, b2, force_two_pass=force_two_pass))
        assert out.shape == x.shape, tag
        assert jnp.allclose(out.astype(jnp.float32), ref, atol=atol, rtol=rtol), tag

    # Base case: one-pass resident path (auto-selected) + forced two-pass.
    x = jax.random.normal(k_x, (2, C_in, 8, 8, 8), dtype=jnp.float32)
    check(x, tag="one-pass f32")
    check(x, force_two_pass=True, tag="two-pass f32")

    # Spatial extent not a multiple of 128 (ragged lanes, no pad/slice copies).
    x3 = jax.random.normal(k_x, (3, C_in, 4, 4, 6), dtype=jnp.float32)
    check(x3, tag="one-pass ragged S")
    check(x3, force_two_pass=True, tag="two-pass ragged S")

    # Awkward batch count: one-pass picks Nb=2 -> ragged batch grid (ceil(9/2)=5).
    x9 = jax.random.normal(k_x, (9, C_in, 4, 4, 4), dtype=jnp.float32)
    check(x9, tag="one-pass ragged batch grid")
    check(x9, force_two_pass=True, tag="two-pass many rows")

    # S larger than the apply-kernel lane tile: exercises (rows, S) tiling with
    # a ragged trailing lane block in the two-pass path.
    x5 = jax.random.normal(k_x, (1, C_in, 4, 40, 26), dtype=jnp.float32)
    check(x5, tag="one-pass long S")
    check(x5, force_two_pass=True, tag="two-pass tiled S")

    # bf16: writeback multiply stays in bf16, mean/FC accumulate in f32.
    xb = jax.random.normal(k_x, (2, C_in, 8, 8, 8), dtype=jnp.bfloat16)
    check(xb, atol=6e-2, rtol=5e-2, tag="one-pass bf16")
    check(xb, force_two_pass=True, atol=6e-2, rtol=5e-2, tag="two-pass bf16")

    # TODO(synk): acti_func1 is a constructor argument in the PyTorch module; fixed to ReLU here.
    print("KERNEL_OK")
</pallas_src>

<mosaic_0001>
module attributes {stable_mosaic.version = 11 : i64} {
  func.func @_se_onepass_kernel(%arg0: i32, %arg1: memref<1x4x512xf32, #tpu.memory_space<vmem>>, %arg2: memref<4x2xf32, #tpu.memory_space<vmem>>, %arg3: memref<1x2xf32, #tpu.memory_space<vmem>>, %arg4: memref<4x2xf32, #tpu.memory_space<vmem>>, %arg5: memref<4x1xf32, #tpu.memory_space<vmem>>, %arg6: memref<1x4x512xf32, #tpu.memory_space<vmem>>) attributes {dimension_semantics = [#tpu.dimension_semantics<parallel>], iteration_bounds = array<i64: 2>, scalar_prefetch = 0 : i64, scratch_operands = 0 : i64, tpu.core_type = #tpu.core_type<tc>, window_params = [{transform_indices = @transform_0, window_bounds = array<i64: 1, 4, 512>}, {pipeline_mode = #tpu.pipeline_mode<synchronous>, transform_indices = @transform_1, window_bounds = array<i64: 4, 2>}, {pipeline_mode = #tpu.pipeline_mode<synchronous>, transform_indices = @transform_2, window_bounds = array<i64: 1, 2>}, {pipeline_mode = #tpu.pipeline_mode<synchronous>, transform_indices = @transform_3, window_bounds = array<i64: 4, 2>}, {pipeline_mode = #tpu.pipeline_mode<synchronous>, transform_indices = @transform_4, window_bounds = array<i64: 4, 1>}, {transform_indices = @transform_5, window_bounds = array<i64: 1, 4, 512>}]} {
    %c0 = arith.constant 0 : index
    %c0_0 = arith.constant 0 : index
    %c0_1 = arith.constant 0 : index
    %0 = vector.load %arg1[%c0, %c0_0, %c0_1] : memref<1x4x512xf32, #tpu.memory_space<vmem>>, vector<1x4x512xf32>
    %cst = arith.constant dense<0.000000e+00> : vector<1x4xf32>
    %1 = vector.multi_reduction <add>, %0, %cst [2] : vector<1x4x512xf32> to vector<1x4xf32>
    %2 = vector.shape_cast %1 : vector<1x4xf32> to vector<1x4x1xf32>
    %cst_2 = arith.constant 0.001953125 : f32
    %3 = vector.broadcast %cst_2 : f32 to vector<1x4x1xf32>
    %4 = arith.mulf %2, %3 : vector<1x4x1xf32>
    %c0_3 = arith.constant 0 : index
    %c0_4 = arith.constant 0 : index
    %5 = vector.load %arg2[%c0_3, %c0_4] : memref<4x2xf32, #tpu.memory_space<vmem>>, vector<4x2xf32>
    %6 = vector.shape_cast %5 : vector<4x2xf32> to vector<1x4x2xf32>
    %7 = vector.broadcast %4 : vector<1x4x1xf32> to vector<1x4x2xf32>
    %8 = arith.mulf %7, %6 : vector<1x4x2xf32>
    %cst_5 = arith.constant dense<0.000000e+00> : vector<1x2xf32>
    %9 = vector.multi_reduction <add>, %8, %cst_5 [1] : vector<1x4x2xf32> to vector<1x2xf32>
    %c0_6 = arith.constant 0 : index
    %c0_7 = arith.constant 0 : index
    %10 = vector.load %arg3[%c0_6, %c0_7] : memref<1x2xf32, #tpu.memory_space<vmem>>, vector<1x2xf32>
    %11 = arith.addf %9, %10 : vector<1x2xf32>
    %cst_8 = arith.constant 0.000000e+00 : f32
    %12 = vector.broadcast %cst_8 : f32 to vector<1x2xf32>
    %13 = arith.maximumf %11, %12 : vector<1x2xf32>
    %14 = vector.shape_cast %13 : vector<1x2xf32> to vector<1x1x2xf32>
    %c0_9 = arith.constant 0 : index
    %c0_10 = arith.constant 0 : index
    %15 = vector.load %arg4[%c0_9, %c0_10] : memref<4x2xf32, #tpu.memory_space<vmem>>, vector<4x2xf32>
    %16 = vector.shape_cast %15 : vector<4x2xf32> to vector<1x4x2xf32>
    %17 = vector.broadcast %14 : vector<1x1x2xf32> to vector<1x4x2xf32>
    %18 = arith.mulf %17, %16 : vector<1x4x2xf32>
    %cst_11 = arith.constant dense<0.000000e+00> : vector<1x4xf32>
    %19 = vector.multi_reduction <add>, %18, %cst_11 [2] : vector<1x4x2xf32> to vector<1x4xf32>
    %20 = vector.shape_cast %19 : vector<1x4xf32> to vector<1x4x1xf32>
    %c0_12 = arith.constant 0 : index
    %c0_13 = arith.constant 0 : index
    %21 = vector.load %arg5[%c0_12, %c0_13] : memref<4x1xf32, #tpu.memory_space<vmem>>, vector<4x1xf32>
    %22 = vector.shape_cast %21 : vector<4x1xf32> to vector<1x4x1xf32>
    %23 = arith.addf %20, %22 : vector<1x4x1xf32>
    %24 = arith.negf %23 : vector<1x4x1xf32>
    %25 = math.exp %24 : vector<1x4x1xf32>
    %cst_14 = arith.constant 1.000000e+00 : f32
    %26 = vector.broadcast %cst_14 : f32 to vector<1x4x1xf32>
    %27 = arith.addf %26, %25 : vector<1x4x1xf32>
    %28 = arith.divf %26, %27 : vector<1x4x1xf32>
    %cst_15 = arith.constant 1.000000e+00 : f32
    %29 = vector.broadcast %cst_15 : f32 to vector<1x4x1xf32>
    %30 = arith.addf %28, %29 : vector<1x4x1xf32>
    %c0_16 = arith.constant 0 : index
    %c0_17 = arith.constant 0 : index
    %c0_18 = arith.constant 0 : index
    %31 = vector.load %arg1[%c0_16, %c0_17, %c0_18] : memref<1x4x512xf32, #tpu.memory_space<vmem>>, vector<1x4x512xf32>
    %32 = vector.broadcast %30 : vector<1x4x1xf32> to vector<1x4x512xf32>
    %33 = arith.mulf %31, %32 : vector<1x4x512xf32>
    %c0_19 = arith.constant 0 : index
    %c0_20 = arith.constant 0 : index
    %c0_21 = arith.constant 0 : index
    %34 = vector.load %arg6[%c0_19, %c0_20, %c0_21] : memref<1x4x512xf32, #tpu.memory_space<vmem>>, vector<1x4x512xf32>
    tpu.vector_store %arg6[%c0_19, %c0_20, %c0_21], %33 {strides = array<i32>} : memref<1x4x512xf32, #tpu.memory_space<vmem>>, vector<1x4x512xf32>,
    return
  }
  func.func @transform_0(%arg0: i32) -> (i32, i32, i32) {
    %c0_i32 = arith.constant 0 : i32
    %c0_i32_0 = arith.constant 0 : i32
    %c0_i32_1 = arith.constant 0 : i32
    return %arg0, %c0_i32, %c0_i32_0 : i32, i32, i32
  }
  func.func @transform_1(%arg0: i32) -> (i32, i32) {
    %c0_i32 = arith.constant 0 : i32
    %c0_i32_0 = arith.constant 0 : i32
    %c0_i32_1 = arith.constant 0 : i32
    return %c0_i32, %c0_i32_0 : i32, i32
  }
  func.func @transform_2(%arg0: i32) -> (i32, i32) {
    %c0_i32 = arith.constant 0 : i32
    %c0_i32_0 = arith.constant 0 : i32
    %c0_i32_1 = arith.constant 0 : i32
    return %c0_i32, %c0_i32_0 : i32, i32
  }
  func.func @transform_3(%arg0: i32) -> (i32, i32) {
    %c0_i32 = arith.constant 0 : i32
    %c0_i32_0 = arith.constant 0 : i32
    %c0_i32_1 = arith.constant 0 : i32
    return %c0_i32, %c0_i32_0 : i32, i32
  }
  func.func @transform_4(%arg0: i32) -> (i32, i32) {
    %c0_i32 = arith.constant 0 : i32
    %c0_i32_0 = arith.constant 0 : i32
    %c0_i32_1 = arith.constant 0 : i32
    return %c0_i32, %c0_i32_0 : i32, i32
  }
  func.func @transform_5(%arg0: i32) -> (i32, i32, i32) {
    %c0_i32 = arith.constant 0 : i32
    %c0_i32_0 = arith.constant 0 : i32
    %c0_i32_1 = arith.constant 0 : i32
    return %arg0, %c0_i32, %c0_i32_0 : i32, i32, i32
  }
}

</mosaic_0001>

<bundles_post_ra>
// kernel: tpu_custom_call.1
= control target key start
LH: loop header
LB: loop body
LE: loop exit
PB: predicated region body
PF: predicated region fallthrough
CT: control target
= control target key end

     0   :  { %10 = vsyncpa [#allocation3], 0  ;;  %s776_s0 = inlined_call_operand.hbm [shape: f32[2,4,512], index: 0, kind: input, shape index: {}]   ;;  %s777_s1 = inlined_call_operand.vmem [shape: f32[4,2], index: 1, kind: input, shape index: {}]   ;;  %s778_s2 = inlined_call_operand.vmem [shape: f32[1,2], index: 2, kind: input, shape index: {}]   ;;  %s779_s3 = inlined_call_operand.vmem [shape: f32[4,2], index: 3, kind: input, shape index: {}]   ;;  %s780_s4 = inlined_call_operand.vmem [shape: f32[4,1], index: 4, kind: input, shape index: {}]   ;;  %s781_s5 = inlined_call_operand.hbm [shape: f32[2,4,512], index: 5, kind: output, shape index: {}]  }
   0x1   :  { %12 = vsyncpa [#allocation3 + $0x1], 0 }
   0x2   :  { %13 = vsyncpa [#allocation4], 0 }
   0x3   :  { %15 = vsyncpa [#allocation4 + $0x1], 0  ;;  %s597_s18 = smov 0   ;;  %s599_s19 = smov 0  }
   0x4   :  { %s601_s20 = smov 0   ;;  %s603_s21 = smov 0  }
   0x5 LB: > { %s618_s22 = sadd.s32 4294967295, %s561_s21   ;;  %s392_s23 = sadd.s32 4294967294, %s561_s21   ;;  %s561_s21 = sphi %s603_s21, %s796_s21   ;;  %s557_s20 = sphi %s601_s20, %s795_s20   ;;  %s553_s19 = sphi %s599_s19, %s794_s19   ;;  %s549_s18 = sphi %s597_s18, %s793_s18  }
   0x6   : > { %s622_s24 = sadd.s32 1, %s561_s21   ;;  %s28_s25 = sadd.s32 1, %s557_s20 }
   0x7   : > { %s25_s26 = ssub.s32 %s561_s21, %s622_s24  ;;  %p35_p0 = scmp.ne.s32.totalorder %s557_s20, %s553_s19 }
   0x8   : > { %p26_p1 = scmp.eq.s32.totalorder %s25_s26, 0  ;;  %p36_p2 = scmp.eq.s32.totalorder %s561_s21, 0 }
   0x9   : > { %p41_p3 = scmp.ne.s32.totalorder %s553_s19, %s549_s18  ;;  %p42_p4 = scmp.eq.s32.totalorder %s618_s22, 0 }
   0xa   : > { %s634_s27 = scalar_select %p26_p1, %s557_s20, %s28_s25  }
   0xb   : > { %p636_p5 = por %p36_p2, %p35_p0  ;;  %p640_p6 = por %p42_p4, %p41_p3 }
   0xc   : > { %p149_p7 = scmp.eq.s32.totalorder %s618_s22, 1  ;;  %p155_p8 = scmp.eq.s32.totalorder %s392_s23, 1 }
   0xd   : > { %p421_p10 = scmp.lt.s32.totalorder %s561_s21, 2  ;;  %s187_s7 = sand.u32 1, %s557_s20  }
   0xe   : > { %p647_p11 = por %p149_p7, %p35_p0  ;;  %p651_p12 = por %p155_p8, %p41_p3 }
   0xf   : > { %s407_s8 = sshll.u32 %s561_s21, 8  ;;  %s395_s9 = sshll.u32 %s187_s7, 4 }
  0x10   : > { %s785_s30 = scalar_select %p647_p11, 1, 0 }
  0x11   : > { %s786_s6 = scalar_select %p651_p12, 1, 0 }
  0x12   : > { %s660_s12 = scalar_lea.hbm %s776_s0, %s407_s8  ;;  %s191_s13 = scalar_lea.vmem [#allocation2], %s395_s9 }
  0x13   : > { %s199_s14 = sshll.u32 %s191_s13, 4  ;;  %p664_p13 = pnand %p421_p10, %p636_p5  ;;  %s668_s14 = int_to_ptr.vmem [resolvable:$true] %s199_s14 }
  0x14   : > { %s188_s16 = scalar_lea.sflag [#allocation3], %s187_s7  ;;  %s465_s17 = scalar_lea.hbm %s660_s12, 256 }
  0x15   : > { %p466_p2 = scmp.ne.s32.totalorder %s660_s12, %s465_s17  ;;  %p467_p3 = pneg %p664_p13 }
  0x16   : > { %s470_s26 = scalar_lea.hbm %s776_s0, 512  ;;  %p471_p5 = scmp.lt.u32.totalorder %s660_s12, %s776_s0 }
  0x17   : > { %p468_p4 = pnand %p467_p3, %p466_p2  ;;  %p472_p8 = scmp.lt.u32.totalorder %s470_s26, %s465_s17 }
  0x18   : > { %p474_p9 = scmp.lt.u32.totalorder %s465_s17, %s660_s12 }
  0x19   : > { %p469_p7 = pneg %p468_p4  ;;  %p473_p10 = por %p472_p8, %p471_p5 }
  0x1b   : > { %p475_p0 = por %p474_p9, %p473_p10 }
  0x1d   : > { %p476_p1 = pnand %p475_p0, %p469_p7 }
  0x1f   : > { %479 = shalt.err (!%p476_p1)
}
  0x20   : > { %s480_s7 = scalar_lea.vmem %s668_s14, 256  ;;  %s563_s9 = smov [#allocation2]  }
  0x21   : > { %p481_p2 = scmp.ne.s32.totalorder %s668_s14, %s480_s7  ;;  %s485_s10 = sshll.u32 %s563_s9, 4  ;;  %s486_s10 = int_to_ptr.vmem [resolvable:$false] %s485_s10 }
  0x22   : > { %s487_s11 = scalar_lea.vmem %s486_s10, 512  ;;  %p488_p11 = scmp.lt.s32.totalorder %s668_s14, %s486_s10 }
  0x23   : > { %p483_p4 = pnand %p481_p2, %p467_p3  ;;  %p489_p5 = scmp.lt.s32.totalorder %s487_s11, %s480_s7 }
  0x25   : > { %p484_p12 = pneg %p483_p4  ;;  %p490_p8 = por %p489_p5, %p488_p11 }
  0x27   : > { %p491_p9 = pnand %p490_p8, %p484_p12 }
  0x29   : > { %494 = shalt.err (!%p491_p9)
}
  0x2a   : > { %416 = dma.hbm_to_vmem [thread:$0]  (!%p664_p13), %s660_s12, 256, %s668_s14, %s188_s16  }
  0x2b   : > { %p788_p0 = scmp.lt.s32.totalorder %s561_s21, 3  ;;  %p789_p1 = scmp.ge.s32.totalorder %s561_s21, 1 }
  0x2d   : > { %p205_p3 = pnand %p789_p1, %p788_p0 }
  0x2e   : > { %s702_s13 = sand.u32 (!%p205_p3), 1, %s553_s19  }
  0x2f   : > { %208 = sbr.rel (%p205_p3) target bundleno = 551 (0x227), region = 40  ;;  %s399_s17 = sshll.u32 (!%p205_p3), %s702_s13, 4 }
  0x30   : > { %s211_s23 = scalar_lea.sflag (!%p205_p3), [#allocation3], %s702_s13  ;;  %s214_s15 = scalar_lea.vmem (!%p205_p3), [#allocation2], %s399_s17 }
  0x36   : > { %540 = dma.done.wait (%p640_p6), %s211_s23, 256  }
  0x37   : > { %542 = vsyncadd (%p640_p6), %s211_s23, 4294967040  ;;  %vm249_vm0 = vcmask 1043456   ;;  %v241_v0 = vld [vmem:[%s214_s15] sm:$0xff]  ;;  %v242_v1 = vld [vmem:[%s214_s15 + $0x8] sm:$0xff]  ;;  %vm262_vm1 = vcmask 11264   ;;  %v274_v19 = vlaneseq  ;;  %v564_v32 = vmov 0  }
  0x38   : > { %v245_v2 = vcombine.high %v241_v0, %v241_v0  ;;  %v246_v3 = vcombine.high %v242_v1, %v242_v1  ;;  %v250_v4 = vsel %vm249_vm0, %v241_v0, 0.0  ;;  %v253_v6 = vsel %vm249_vm0, %v242_v1, 0.0  ;;  %v260_v11 = vld [vmem:[%s777_s1] sm:$0xf]  ;;  %457 = vset.pattern.permute.xlu1 %v564_v32  ;;  %458 = vset.pattern.permute.xlu0 %v564_v32  ;;  %s408_s7 = sshll.u32 %s618_s22, 8  ;;  %s240_s9 = scalar_lea.vmem [#allocation5], %s399_s17 }
  0x39   : > { %v275_v22 = vshrl.u32 %v274_v19, 7  ;;  %v270_v23 = vld [vmem:[%s778_s2] sm:$0x1]  ;;  %v565_v41 = vmov 839922192   ;;  %s322_s10 = sshll.u32 %s240_s9, 4  ;;  %s732_s15 = scalar_lea.hbm %s781_s5, %s408_s7  ;;  %s734_s10 = int_to_ptr.vmem [resolvable:$true] %s322_s10 }
  0x3a   : > { %v251_v5 = vsel %vm249_vm0, %v245_v2, 0.0  ;;  %v255_v8 = vsel %vm249_vm0, %v246_v3, 0.0  ;;  %v273_v28 = vld [vmem:[%s779_s3] sm:$0xf]  ;;  %v296_v42 = vunpack.c.l.s4 %v565_v41  ;;  %s308_s12 = scalar_lea.sflag [#allocation4], %s702_s13  ;;  %s495_s22 = scalar_lea.vmem %s734_s10, 256 }
  0x3b   : > { %v252_v7 = vadd.f32 %v251_v5, %v250_v4  ;;  %v276_v26 = vsub.s32 0, %v275_v22  ;;  %v282_v33 = vld [vmem:[%s780_s4] sm:$0xf]  ;;  %p496_p6 = scmp.ne.s32.totalorder %s734_s10, %s495_s22  ;;  %p790_p11 = scmp.ne.s32.totalorder %s785_s30, 0 }
  0x3c   : > { %v297_v43 = vunpack.c.0.s8 %v296_v42  ;;  %s566_s17 = smov [#allocation5]  }
  0x3d   : > { %v254_v9 = vadd.f32 %v253_v6, %v252_v7  ;;  %p497_p12 = pnand %p496_p6, %p790_p11  ;;  %s499_s14 = sshll.u32 %s566_s17, 4  ;;  %s500_s14 = int_to_ptr.vmem [resolvable:$false] %s499_s14 }
  0x3e   : > { %v300_v44 = vsub.s32 %v297_v43, %v275_v22  ;;  %s501_s29 = scalar_lea.vmem %s500_s14, 512  ;;  %p502_p7 = scmp.lt.s32.totalorder %s734_s10, %s500_s14 }
  0x3f   : > { %v256_v10 = vadd.f32 %v255_v8, %v254_v9  ;;  %p498_p13 = pneg %p497_p12  ;;  %p503_p10 = scmp.lt.s32.totalorder %s501_s29, %s495_s22 }
  0x41   : > { %257 = vadd.xlane.f32.xlu0 %v256_v10  ;;  %p504_p2 = por %p503_p10, %p502_p7 }
  0x43   : > { %p505_p4 = pnand %p504_p2, %p498_p13 }
  0xce   : > { %v258_v12 = vpop.xlane.xlu0 %257 }
  0xcf   : > { %v259_v13 = vmul.f32 0.001953125, %v258_v12 }
  0xd1   : > { %v261_v14 = vmul.f32 %v260_v11, %v259_v13 }
  0xd3   : > { %v263_v15 = vsel %vm262_vm1, %v261_v14, 0.0 }
  0xd4   : > { %v264_v16 = vrot.slane %v263_v15, 4 }
  0xd6   : > { %v265_v17 = vadd.f32 %v264_v16, %v263_v15 }
  0xd8   : > { %v266_v18 = vrot.slane %v265_v17, 2 }
  0xda   : > { %v267_v20 = vadd.f32 %v266_v18, %v265_v17 }
  0xdc   : > { %v268_v21 = vrot.slane %v267_v20, 1 }
  0xde   : > { %v269_v24 = vadd.f32 %v268_v21, %v267_v20 }
  0xe0   : > { %v271_v25 = vadd.f32 %v270_v23, %v269_v24 }
  0xe2   : > { %v272_v27 = vmax.f32 %v271_v25, 0.0 }
  0xe4   : > { %v277_v29 = vrot.slane %v272_v27, %v276_v26 }
  0xe6   : > { %v278_v30 = vmul.f32 %v277_v29, %v273_v28 }
  0xe8   : > { %v279_v31 = vsel %vm262_vm1, %v278_v30, 0.0 }
  0xe9   : > { %280 = vadd.xlane.f32.xlu0 %v279_v31 }
 0x176   : > { %v281_v34 = vpop.xlane.xlu0 %280 }
 0x177   : > { %v283_v35 = vadd.f32 %v282_v33, %v281_v34 }
 0x179   : > { %v401_v36 = vmul.f32 -1.442695, %v283_v35 }
 0x17b   : > { %461 = vpow2.f32 %v401_v36 }
 0x185   : > { %v462_v37 = vpop.eup %461 }
 0x186   : > { %v287_v38 = vadd.f32 1.0, %v462_v37 }
 0x188   : > { %463 = vrcp.f32 %v287_v38 }
 0x192   : > { %v464_v39 = vpop.eup %463 }
 0x193   : > { %v290_v40 = vadd.f32 1.0, %v464_v39 }
 0x195   : > { %293 = vperm.xlu1 %457, %v290_v40  }
 0x214   : > { %v294_v45 = vpop.permute.xlu1 %293 }
 0x215   : > { %v301_v46 = vrot.slane %v294_v45, %v300_v44 }
 0x217   : > { %v303_v47 = vmul.f32 %v301_v46, %v241_v0  ;;  %v304_v48 = vmul.f32 %v301_v46, %v242_v1 }
 0x219   : > { %305 = vst [vmem:[%s240_s9] sm:$0xff] %v303_v47  ;;  %306 = vst [vmem:[%s240_s9 + $0x8] sm:$0xff] %v304_v48 }
 0x21a   : > { %508 = shalt.err (!%p505_p4)
}
 0x21b   : > { %s509_s13 = scalar_lea.hbm %s732_s15, 256  ;;  %s513_s26 = scalar_lea.hbm %s781_s5, 512 }
 0x21c   : > { %p510_p5 = scmp.ne.s32.totalorder %s732_s15, %s509_s13  ;;  %p514_p0 = scmp.lt.u32.totalorder %s732_s15, %s781_s5 }
 0x21d   : > { %p515_p1 = scmp.lt.u32.totalorder %s513_s26, %s509_s13  ;;  %p517_p6 = scmp.lt.u32.totalorder %s509_s13, %s732_s15 }
 0x21e   : > { %p511_p8 = pnand %p510_p5, %p790_p11 }
 0x21f   : > { %p516_p3 = por %p515_p1, %p514_p0 }
 0x220   : > { %p512_p9 = pneg %p511_p8 }
 0x221   : > { %p518_p12 = por %p517_p6, %p516_p3 }
 0x223   : > { %p519_p13 = pnand %p518_p12, %p512_p9 }
 0x225   : > { %522 = shalt.err (!%p519_p13)
}
 0x226   : > { %411 = dma.vmem_to_hbm [thread:$0]  (%p790_p11), %s734_s10, 256, %s732_s15, %s308_s12  }
 0x227 PF: > { %s334_s7 = sand.u32 1, %s549_s18   ;;  %p791_p7 = scmp.ne.s32.totalorder %s786_s6, 0 }
 0x228   : > { %p792_p10 = scmp.ge.s32.totalorder %s561_s21, 2  ;;  %s335_s9 = scalar_lea.sflag [#allocation4], %s334_s7 }
 0x22a   : > { %p418_p2 = pnand %p792_p10, %p791_p7 }
 0x22c   : > { %544 = dma.done.wait (!%p418_p2), %s335_s9, 256  }
 0x22d   : > { %546 = vsyncadd (!%p418_p2), %s335_s9, 4294967040  ;;  %p18_p4 = scmp.ge.s32.totalorder %s622_s24, 4   ;;  %s793_s18 = smov %s553_s19 }
 0x22e   : > { %s794_s19 = smov %s557_s20  ;;  %s795_s20 = smov %s634_s27 }
 0x22f   : > { %s796_s21 = smov %s622_s24  ;;  %20 = sbr.rel (!%p18_p4) target bundleno = 5 (0x5), region = 85 }
 0x236   :  { %340 = vsyncpa [#allocation3], 1 }
 0x237   :  { %342 = vsyncpa [#allocation3 + $0x1], 1 }
 0x238   :  { %343 = vsyncpa [#allocation4], 1 }
 0x239   :  { %345 = vsyncpa [#allocation4 + $0x1], 1 }

</bundles_post_ra>
